<compile_context>
chip_gen: v7x
topology: tpu7x:2x2x1
jax: 0.10.0
libtpu: 0.0.40
codegen_flags: <defaults>
</compile_context>

<pallas_src>
import functools

import jax
import jax.numpy as jnp
from jax import lax
from jax.experimental import pallas as pl
from jax.experimental.pallas import tpu as pltpu

LANE = 128


def affine_kernel(x_ref, w_ref, b_ref, o_ref):
    # One MXU matmul with f32 accumulation + broadcast bias add; lane-dense store.
    o_ref[...] = (
        jnp.dot(x_ref[...], w_ref[...], preferred_element_type=jnp.float32)
        + b_ref[...]
    ).astype(o_ref.dtype)


def init_params(key, in_sz=1000, out_sz=20, layers=(200, 120, 60), dtype=jnp.float32):
    """torch.nn.Linear-style init: U(-1/sqrt(fan_in), +1/sqrt(fan_in)).
    W stored as (in, out) == W_pt.T, b as (1, out)."""
    dims = [in_sz, *layers, out_sz]
    params = []
    for i in range(4):
        fan_in, fan_out = dims[i], dims[i + 1]
        key, kw, kb = jax.random.split(key, 3)
        bound = 1.0 / (fan_in ** 0.5)
        W = jax.random.uniform(kw, (fan_in, fan_out), dtype, -bound, bound)
        b = jax.random.uniform(kb, (1, fan_out), dtype, -bound, bound)
        params.append((W, b))
    return params


def collapse_params(params):
    """Fold fc1->fc2->fc3->fc4 (no activations) into one affine map, done ONCE
    outside the kernel.  Output dim is zero-padded to 128 lanes (and no more:
    extra lanes would only add output HBM writes)."""
    hi = lax.Precision.HIGHEST
    W, b = params[0]
    for wi, bi in params[1:]:
        W = jnp.dot(W, wi, precision=hi)
        b = jnp.dot(b, wi, precision=hi) + bi
    out_sz = W.shape[1]
    n_pad = max(LANE, pl.cdiv(out_sz, LANE) * LANE)
    w_eff = jnp.zeros((W.shape[0], n_pad), W.dtype).at[:, :out_sz].set(W)
    b_eff = jnp.zeros((1, n_pad), b.dtype).at[:, :out_sz].set(b)
    return w_eff, b_eff, out_sz


def _pick_batch_tile(B, block_b):
    """Big tiles amortize per-grid-step overhead, but keep >=2 grid steps when
    the batch allows so v7x's two TensorCores both get work."""
    if B >= 2 * block_b:
        return block_b                       # grid >= 2 automatically
    if B >= 2 * LANE and B % 2 == 0 and (B // 2) % 8 == 0:
        return B // 2                        # exactly 2 parallel steps
    return B                                 # one full block (== full dim, always legal)


@functools.partial(jax.jit, static_argnames=("out_sz", "block_b"))
def mymodule_forward(x, w_eff, b_eff, *, out_sz, block_b=512):
    """x: (B, in_sz) f32 -> (B, out_sz) f32.  Equivalent to MyModule.forward."""
    B, K = x.shape
    n_pad = w_eff.shape[1]

    tb = _pick_batch_tile(B, block_b)
    grid = (pl.cdiv(B, tb),)   # partial trailing block is fine; no jnp.pad copy of x

    itemsize = jnp.dtype(x.dtype).itemsize
    # Double-buffered VMEM footprint (x tile, W, b, out tile) + 1 MiB headroom,
    # capped well under v7x's 32 MiB scoped / 64 MiB physical VMEM.
    vmem_bytes = 2 * (tb * K + K * n_pad + n_pad + tb * n_pad) * itemsize + (1 << 20)
    vmem_bytes = int(min(max(vmem_bytes, 4 << 20), 32 << 20))

    cost = pl.CostEstimate(
        flops=2 * B * K * n_pad,
        transcendentals=0,
        bytes_accessed=(B * K + K * n_pad + n_pad + B * n_pad) * itemsize,
    )

    out = pl.pallas_call(
        affine_kernel,
        out_shape=jax.ShapeDtypeStruct((B, n_pad), x.dtype),
        grid=grid,
        in_specs=[
            pl.BlockSpec((tb, K), lambda i: (i, 0)),      # x: pipelined over batch
            pl.BlockSpec((K, n_pad), lambda i: (0, 0)),   # W_eff: VMEM-resident
            pl.BlockSpec((1, n_pad), lambda i: (0, 0)),   # b_eff: VMEM-resident
        ],
        out_specs=pl.BlockSpec((tb, n_pad), lambda i: (i, 0)),
        compiler_params=pltpu.CompilerParams(
            dimension_semantics=("parallel",),  # v7x: shard batch over 2 TCs
            vmem_limit_bytes=vmem_bytes,
        ),
        cost_estimate=cost,
    )(x, w_eff, b_eff)

    # Column slice stays inside this jit (no separate XLA pass over the padded output).
    return out[:, :out_sz]


def reference_forward(x, params):
    """Layered reference, identical op order to the PyTorch module."""
    hi = lax.Precision.HIGHEST
    h = x
    for W, b in params:
        h = jnp.dot(h, W, precision=hi) + b
    return h


if __name__ == "__main__":
    # NOTE: the stray `x = x.reshape((3, 2))` in the original file is script-level
    # noise unrelated to MyModule.forward; the module consumes (batch, in_sz).
    key = jax.random.PRNGKey(0)
    kx, kp, kx2 = jax.random.split(key, 3)

    in_sz, out_sz, layers = 1000, 20, (200, 120, 60)

    params = init_params(kp, in_sz=in_sz, out_sz=out_sz, layers=layers)
    w_eff, b_eff, out_cols = collapse_params(params)

    # Case 1: batch=256 -> tile 128, grid=(2,) "parallel" (both v7x TensorCores busy).
    x = jax.random.normal(kx, (256, in_sz), jnp.float32)
    out = jax.block_until_ready(mymodule_forward(x, w_eff, b_eff, out_sz=out_cols))
    ref = reference_forward(x, params)
    assert out.shape == (256, out_cols), out.shape
    assert jnp.allclose(out, ref, atol=5e-3, rtol=5e-3), "case-1 mismatch vs JAX reference"

    # Case 2: small ragged batch (not a multiple of 8) -> single full block, no pad copy.
    x2 = jax.random.normal(kx2, (37, in_sz), jnp.float32)
    out2 = jax.block_until_ready(mymodule_forward(x2, w_eff, b_eff, out_sz=out_cols))
    ref2 = reference_forward(x2, params)
    assert out2.shape == (37, out_cols), out2.shape
    assert jnp.allclose(out2, ref2, atol=5e-3, rtol=5e-3), "case-2 mismatch vs JAX reference"

    print("KERNEL_OK")
</pallas_src>

<mosaic_0001>
module attributes {stable_mosaic.version = 11 : i64} {
  func.func @affine_kernel(%arg0: i32, %arg1: memref<128x1000xf32, #tpu.memory_space<vmem>>, %arg2: memref<1000x128xf32, #tpu.memory_space<vmem>>, %arg3: memref<1x128xf32, #tpu.memory_space<vmem>>, %arg4: memref<128x128xf32, #tpu.memory_space<vmem>>) attributes {dimension_semantics = [#tpu.dimension_semantics<parallel>], iteration_bounds = array<i64: 2>, scalar_prefetch = 0 : i64, scratch_operands = 0 : i64, tpu.core_type = #tpu.core_type<tc>, window_params = [{transform_indices = @transform_0, window_bounds = array<i64: 128, 1000>}, {pipeline_mode = #tpu.pipeline_mode<synchronous>, transform_indices = @transform_1, window_bounds = array<i64: 1000, 128>}, {pipeline_mode = #tpu.pipeline_mode<synchronous>, transform_indices = @transform_2, window_bounds = array<i64: 1, 128>}, {transform_indices = @transform_3, window_bounds = array<i64: 128, 128>}]} {
    %c0 = arith.constant 0 : index
    %c0_0 = arith.constant 0 : index
    %0 = vector.load %arg1[%c0, %c0_0] : memref<128x1000xf32, #tpu.memory_space<vmem>>, vector<128x1000xf32>
    %c0_1 = arith.constant 0 : index
    %c0_2 = arith.constant 0 : index
    %1 = vector.load %arg2[%c0_1, %c0_2] : memref<1000x128xf32, #tpu.memory_space<vmem>>, vector<1000x128xf32>
    %cst = arith.constant dense<0.000000e+00> : vector<128x128xf32>
    %2 = tpu.matmul %0, %1, %cst {dimension_numbers = #tpu.dot_dimension_numbers<[1], [0], [0], [1], [0, 0, 1, 1], [], []>} : vector<128x1000xf32>, vector<1000x128xf32>, vector<128x128xf32> -> vector<128x128xf32>
    %c0_3 = arith.constant 0 : index
    %c0_4 = arith.constant 0 : index
    %3 = vector.load %arg3[%c0_3, %c0_4] : memref<1x128xf32, #tpu.memory_space<vmem>>, vector<1x128xf32>
    %4 = vector.broadcast %3 : vector<1x128xf32> to vector<128x128xf32>
    %5 = arith.addf %2, %4 : vector<128x128xf32>
    %c0_5 = arith.constant 0 : index
    %c0_6 = arith.constant 0 : index
    %6 = vector.load %arg4[%c0_5, %c0_6] : memref<128x128xf32, #tpu.memory_space<vmem>>, vector<128x128xf32>
    tpu.vector_store %arg4[%c0_5, %c0_6], %5 {strides = array<i32>} : memref<128x128xf32, #tpu.memory_space<vmem>>, vector<128x128xf32>,
    return
  }
  func.func @transform_0(%arg0: i32) -> (i32, i32) {
    %c0_i32 = arith.constant 0 : i32
    %c0_i32_0 = arith.constant 0 : i32
    return %arg0, %c0_i32 : i32, i32
  }
  func.func @transform_1(%arg0: i32) -> (i32, i32) {
    %c0_i32 = arith.constant 0 : i32
    %c0_i32_0 = arith.constant 0 : i32
    %c0_i32_1 = arith.constant 0 : i32
    return %c0_i32, %c0_i32_0 : i32, i32
  }
  func.func @transform_2(%arg0: i32) -> (i32, i32) {
    %c0_i32 = arith.constant 0 : i32
    %c0_i32_0 = arith.constant 0 : i32
    %c0_i32_1 = arith.constant 0 : i32
    return %c0_i32, %c0_i32_0 : i32, i32
  }
  func.func @transform_3(%arg0: i32) -> (i32, i32) {
    %c0_i32 = arith.constant 0 : i32
    %c0_i32_0 = arith.constant 0 : i32
    return %arg0, %c0_i32 : i32, i32
  }
}

</mosaic_0001>

<bundles_post_ra>
// kernel: mymodule_forward.1
= control target key start
LH: loop header
LB: loop body
LE: loop exit
PB: predicated region body
PF: predicated region fallthrough
CT: control target
= control target key end

     0   :  { %s1586_s12 = smov 0   ;;  %s2235_s0 = inlined_call_operand.vmem [shape: f32[256,1000], index: 0, kind: input, shape index: {}]   ;;  %s2236_s1 = inlined_call_operand.vmem [shape: f32[1000,128], index: 1, kind: input, shape index: {}]   ;;  %s2237_s2 = inlined_call_operand.vmem [shape: f32[1,128], index: 2, kind: input, shape index: {}]   ;;  %s2238_s3 = inlined_call_operand.vmem [shape: f32[256,128], index: 3, kind: output, shape index: {}]  }
   0x1 LB: > { %s1138_s13 = sadd.s32 4294967295, %s1562_s12   ;;  %p1142_p0 = scmp.ge.s32.totalorder %s1562_s12, 1  ;;  %s1562_s12 = sphi %s1586_s12, %s13_s12  }
   0x2   : > { %p139_p1 = scmp.lt.s32.totalorder %s1562_s12, 3 }
   0x4   : > { %p140_p2 = pnand %p1142_p0, %p139_p1 }
   0x5   : > { %v321_v0 = vld [vmem:[%s2236_s1 + $0x80] sm:$0xff] (!%p140_p2)  ;;  %v322_v1 = vld [vmem:[%s2236_s1 + $0x88] sm:$0xff] (!%p140_p2)  ;;  %v323_v11 = vld [vmem:[%s2236_s1 + $0x90] sm:$0xff] (!%p140_p2)  ;;  %s1630_s11 = sshll.u32 (!%p140_p2), %s1138_s13, 4  ;;  %vm437_vm0 = vcmask (!%p140_p2), 850944  }
   0x6   : > { %143 = sbr.rel (%p140_p2) target bundleno = 384 (0x180), region = 32  ;;  %v305_v2 = vld [vmem:[%s2236_s1] sm:$0xff] (!%p140_p2)  ;;  %v1408_v3 = vpack.c.bf16 (!%p140_p2), %v322_v1, %v321_v0  ;;  %v306_v4 = vld [vmem:[%s2236_s1 + $0x8] sm:$0xff] (!%p140_p2)  ;;  %v324_v13 = vld [vmem:[%s2236_s1 + $0x98] sm:$0xff] (!%p140_p2)  ;;  %p165_p3 = scmp.lt.s32.totalorder (!%p140_p2), %s1630_s11, 31 }
   0x7   : > { %v353_v5 = vld [vmem:[%s2236_s1 + $0x180] sm:$0xff] (!%p140_p2)  ;;  %v354_v6 = vld [vmem:[%s2236_s1 + $0x188] sm:$0xff] (!%p140_p2)  ;;  %v1410_v7 = vpack.c.bf16 (!%p140_p2), %v306_v4, %v305_v2  ;;  %v307_v14 = vld [vmem:[%s2236_s1 + $0x10] sm:$0xff] (!%p140_p2)  ;;  %v1412_v16 = vpack.c.bf16 (!%p140_p2), %v324_v13, %v323_v11 }
   0x8   : > { %v1440_v8 = vpack.c.bf16 (!%p140_p2), %v354_v6, %v353_v5  ;;  %v337_v9 = vld [vmem:[%s2236_s1 + $0x100] sm:$0xff] (!%p140_p2)  ;;  %v338_v10 = vld [vmem:[%s2236_s1 + $0x108] sm:$0xff] (!%p140_p2)  ;;  %1409 = vmatprep.subr.bf16.mxu0 (!%p140_p2), %v1408_v3  ;;  %v308_v15 = vld [vmem:[%s2236_s1 + $0x18] sm:$0xff] (!%p140_p2) }
   0x9   : > { %v1442_v12 = vpack.c.bf16 (!%p140_p2), %v338_v10, %v337_v9  ;;  %1411 = vmatpush3.bf16.msra.mxu0 (!%p140_p2), %v1410_v7  ;;  %v1414_v17 = vpack.c.bf16 (!%p140_p2), %v308_v15, %v307_v14  ;;  %v355_v18 = vld [vmem:[%s2236_s1 + $0x190] sm:$0xff] (!%p140_p2)  ;;  %v356_v19 = vld [vmem:[%s2236_s1 + $0x198] sm:$0xff] (!%p140_p2)  ;;  %v325_v23 = vld [vmem:[%s2236_s1 + $0xa0] sm:$0xff] (!%p140_p2) }
   0xa   : > { %1441 = vmatprep.subr.bf16.mxu1 (!%p140_p2), %v1440_v8  ;;  %v339_v20 = vld [vmem:[%s2236_s1 + $0x110] sm:$0xff] (!%p140_p2)  ;;  %v1444_v21 = vpack.c.bf16 (!%p140_p2), %v356_v19, %v355_v18  ;;  %v340_v22 = vld [vmem:[%s2236_s1 + $0x118] sm:$0xff] (!%p140_p2)  ;;  %v326_v24 = vld [vmem:[%s2236_s1 + $0xa8] sm:$0xff] (!%p140_p2)  ;;  %1413 = vmatprep.subr.bf16.mxu0 (!%p140_p2), %v1412_v16 }
   0xb   : > { %1443 = vmatpush3.bf16.msra.mxu1 (!%p140_p2), %v1442_v12  ;;  %v1446_v25 = vpack.c.bf16 (!%p140_p2), %v340_v22, %v339_v20  ;;  %v1416_v26 = vpack.c.bf16 (!%p140_p2), %v326_v24, %v325_v23  ;;  %v309_v27 = vld [vmem:[%s2236_s1 + $0x20] sm:$0xff] (!%p140_p2)  ;;  %v310_v28 = vld [vmem:[%s2236_s1 + $0x28] sm:$0xff] (!%p140_p2)  ;;  %v327_v35 = vld [vmem:[%s2236_s1 + $0xb0] sm:$0xff] (!%p140_p2) }
   0xc   : > { %v357_v29 = vld [vmem:[%s2236_s1 + $0x1a0] sm:$0xff] (!%p140_p2)  ;;  %1445 = vmatprep.subr.bf16.mxu1 (!%p140_p2), %v1444_v21  ;;  %v358_v30 = vld [vmem:[%s2236_s1 + $0x1a8] sm:$0xff] (!%p140_p2)  ;;  %v1418_v33 = vpack.c.bf16 (!%p140_p2), %v310_v28, %v309_v27  ;;  %v328_v36 = vld [vmem:[%s2236_s1 + $0xb8] sm:$0xff] (!%p140_p2) }
   0xd   : > { %v341_v31 = vld [vmem:[%s2236_s1 + $0x120] sm:$0xff]  ;;  %v342_v32 = vld [vmem:[%s2236_s1 + $0x128] sm:$0xff]  ;;  %1415 = vmatpush3.bf16.msra.mxu0 %v1414_v17  ;;  %v1448_v34 = vpack.c.bf16 %v358_v30, %v357_v29  ;;  %v311_v37 = vld [vmem:[%s2236_s1 + $0x30] sm:$0xff]  ;;  %v1420_v39 = vpack.c.bf16 %v328_v36, %v327_v35  ;;  %s2240_s11 = smov (!%p165_p3, %s1630_s11), 31 }
   0xe   : > { %1417 = vmatprep.subr.bf16.mxu0 %v1416_v26  ;;  %v1450_v38 = vpack.c.bf16 %v342_v32, %v341_v31  ;;  %v312_v40 = vld [vmem:[%s2236_s1 + $0x38] sm:$0xff]  ;;  %v359_v41 = vld [vmem:[%s2236_s1 + $0x1b0] sm:$0xff]  ;;  %v329_v46 = vld [vmem:[%s2236_s1 + $0xc0] sm:$0xff]  ;;  %s1167_s23 = sshll.u32 %s2240_s11, 6 }
   0xf   : > { %1447 = vmatpush3.bf16.msra.mxu1 %v1446_v25  ;;  %v360_v42 = vld [vmem:[%s2236_s1 + $0x1b8] sm:$0xff]  ;;  %v343_v44 = vld [vmem:[%s2236_s1 + $0x130] sm:$0xff]  ;;  %v330_v47 = vld [vmem:[%s2236_s1 + $0xc8] sm:$0xff]  ;;  %v1422_v48 = vpack.c.bf16 %v312_v40, %v311_v37  ;;  %s1747_s9 = scalar_lea.vmem %s2235_s0, %s1167_s23 }
  0x10   : > { %1449 = vmatprep.subr.bf16.mxu1 %v1448_v34  ;;  %v1452_v43 = vpack.c.bf16 %v360_v42, %v359_v41  ;;  %v344_v45 = vld [vmem:[%s2236_s1 + $0x138] sm:$0xff]  ;;  %v361_v49 = vld [vmem:[%s2236_s1 + $0x1c0] sm:$0xff]  ;;  %v362_v50 = vld [vmem:[%s2236_s1 + $0x1c8] sm:$0xff]  ;;  %v1424_v52 = vpack.c.bf16 %v330_v47, %v329_v46 }
  0x11   : > { %1419 = vmatpush3.bf16.msra.mxu0 %v1418_v33  ;;  %v1454_v51 = vpack.c.bf16 %v344_v45, %v343_v44  ;;  %v313_v53 = vld [vmem:[%s2236_s1 + $0x40] sm:$0xff]  ;;  %v314_v54 = vld [vmem:[%s2236_s1 + $0x48] sm:$0xff]  ;;  %v1456_v56 = vpack.c.bf16 %v362_v50, %v361_v49  ;;  %v331_v58 = vld [vmem:[%s2236_s1 + $0xd0] sm:$0xff] }
  0x12   : > { %1421 = vmatprep.subr.bf16.mxu0 %v1420_v39  ;;  %v345_v55 = vld [vmem:[%s2236_s1 + $0x140] sm:$0xff]  ;;  %v346_v57 = vld [vmem:[%s2236_s1 + $0x148] sm:$0xff]  ;;  %v332_v59 = vld [vmem:[%s2236_s1 + $0xd8] sm:$0xff]  ;;  %v1426_v62 = vpack.c.bf16 %v314_v54, %v313_v53 }
  0x13   : > { %1451 = vmatpush3.bf16.msra.mxu1 %v1450_v38  ;;  %v363_v60 = vld [vmem:[%s2236_s1 + $0x1d0] sm:$0xff]  ;;  %v364_v61 = vld [vmem:[%s2236_s1 + $0x1d8] sm:$0xff]  ;;  %v1458_v63 = vpack.c.bf16 %v346_v57, %v345_v55  ;;  %v1428_v0 = vpack.c.bf16 %v332_v59, %v331_v58  ;;  %v333_v6 = vld [vmem:[%s2236_s1 + $0xe0] sm:$0xff] }
  0x14   : > { %1453 = vmatprep.subr.bf16.mxu1 %v1452_v43  ;;  %v315_v1 = vld [vmem:[%s2236_s1 + $0x50] sm:$0xff]  ;;  %v316_v2 = vld [vmem:[%s2236_s1 + $0x58] sm:$0xff]  ;;  %v1460_v4 = vpack.c.bf16 %v364_v61, %v363_v60  ;;  %v334_v7 = vld [vmem:[%s2236_s1 + $0xe8] sm:$0xff] }
  0x15   : > { %1423 = vmatpush3.bf16.msra.mxu0 %v1422_v48  ;;  %v347_v3 = vld [vmem:[%s2236_s1 + $0x150] sm:$0xff]  ;;  %v348_v5 = vld [vmem:[%s2236_s1 + $0x158] sm:$0xff]  ;;  %v365_v8 = vld [vmem:[%s2236_s1 + $0x1e0] sm:$0xff]  ;;  %v1430_v10 = vpack.c.bf16 %v316_v2, %v315_v1  ;;  %v1432_v14 = vpack.c.bf16 %v334_v7, %v333_v6  ;;  %v1564_v48 = vmov 0.0|0.0  }
  0x16   : > { %1425 = vmatprep.subr.bf16.mxu0 %v1424_v52  ;;  %v366_v9 = vld [vmem:[%s2236_s1 + $0x1e8] sm:$0xff]  ;;  %v317_v11 = vld [vmem:[%s2236_s1 + $0x60] sm:$0xff]  ;;  %v1462_v13 = vpack.c.bf16 %v348_v5, %v347_v3  ;;  %v335_v19 = vld [vmem:[%s2236_s1 + $0xf0] sm:$0xff] }
  0x17   : > { %1455 = vmatpush3.bf16.msra.mxu1 %v1454_v51  ;;  %v178_v12 = vld [vmem:[%s1747_s9 + $0x8] sm:$0xff]  ;;  %v349_v16 = vld [vmem:[%s2236_s1 + $0x160] sm:$0xff]  ;;  %v1464_v18 = vpack.c.bf16 %v366_v9, %v365_v8  ;;  %v336_v20 = vld [vmem:[%s2236_s1 + $0xf8] sm:$0xff] }
  0x18   : > { %1457 = vmatprep.subr.bf16.mxu1 %v1456_v56  ;;  %v318_v15 = vld [vmem:[%s2236_s1 + $0x68] sm:$0xff]  ;;  %550 = vmatprep.mubr.f32.mxu0 %v178_v12  ;;  %v180_v21 = vld [vmem:[%s1747_s9 + $0x18] sm:$0xff]  ;;  %v367_v22 = vld [vmem:[%s2236_s1 + $0x1f0] sm:$0xff]  ;;  %v1436_v26 = vpack.c.bf16 %v336_v20, %v335_v19 }
  0x19   : > { %1427 = vmatpush3.bf16.msra.mxu0 %v1426_v62  ;;  %v350_v17 = vld [vmem:[%s2236_s1 + $0x168] sm:$0xff]  ;;  %v368_v23 = vld [vmem:[%s2236_s1 + $0x1f8] sm:$0xff]  ;;  %695 = vmatprep.mubr.f32.mxu1 %v180_v21  ;;  %v1434_v24 = vpack.c.bf16 %v318_v15, %v317_v11  ;;  %v319_v27 = vld [vmem:[%s2236_s1 + $0x70] sm:$0xff] }
  0x1a   : > { %1429 = vmatprep.subr.bf16.mxu0 %v1428_v0  ;;  %v1466_v25 = vpack.c.bf16 %v350_v17, %v349_v16  ;;  %v320_v28 = vld [vmem:[%s2236_s1 + $0x78] sm:$0xff]  ;;  %v351_v29 = vld [vmem:[%s2236_s1 + $0x170] sm:$0xff]  ;;  %v1468_v30 = vpack.c.bf16 %v368_v23, %v367_v22  ;;  %v385_v32 = vld [vmem:[%s2236_s1 + $0x280] sm:$0xff] }
  0x1b   : > { %1459 = vmatpush3.bf16.msra.mxu1 %v1458_v63  ;;  %v352_v31 = vld [vmem:[%s2236_s1 + $0x178] sm:$0xff]  ;;  %v386_v33 = vld [vmem:[%s2236_s1 + $0x288] sm:$0xff]  ;;  %v1438_v34 = vpack.c.bf16 %v320_v28, %v319_v27  ;;  %v369_v37 = vld [vmem:[%s2236_s1 + $0x200] sm:$0xff] }
  0x1c   : > { %1461 = vmatprep.subr.bf16.mxu1 %v1460_v4  ;;  %v1470_v35 = vpack.c.bf16 %v352_v31, %v351_v29  ;;  %v1472_v36 = vpack.c.bf16 %v386_v33, %v385_v32  ;;  %v370_v38 = vld [vmem:[%s2236_s1 + $0x208] sm:$0xff]  ;;  %v401_v39 = vld [vmem:[%s2236_s1 + $0x300] sm:$0xff]  ;;  %v387_v41 = vld [vmem:[%s2236_s1 + $0x290] sm:$0xff] }
  0x1d   : > { %1431 = vmatpush3.bf16.msra.mxu0 %v1430_v10  ;;  %v402_v40 = vld [vmem:[%s2236_s1 + $0x308] sm:$0xff]  ;;  %v388_v42 = vld [vmem:[%s2236_s1 + $0x298] sm:$0xff]  ;;  %v177_v43 = vld [vmem:[%s1747_s9] sm:$0xff]  ;;  %v1474_v44 = vpack.c.bf16 %v370_v38, %v369_v37 }
  0x1e   : > { %1433 = vmatprep.subr.bf16.mxu0 %v1432_v14  ;;  %v179_v45 = vld [vmem:[%s1747_s9 + $0x10] sm:$0xff]  ;;  %v186_v46 = vld [vmem:[%s1747_s9 + $0x48] sm:$0xff]  ;;  %v188_v47 = vld [vmem:[%s1747_s9 + $0x58] sm:$0xff]  ;;  %v1505_v49 = vpack.c.bf16 %v402_v40, %v401_v39  ;;  %v1476_v50 = vpack.c.bf16 %v388_v42, %v387_v41 }
  0x1f   : > { %1463 = vmatpush3.bf16.msra.mxu1 %v1462_v13  ;;  %v371_v51 = vld [vmem:[%s2236_s1 + $0x210] sm:$0xff]  ;;  %v372_v52 = vld [vmem:[%s2236_s1 + $0x218] sm:$0xff]  ;;  %v389_v55 = vld [vmem:[%s2236_s1 + $0x2a0] sm:$0xff] }
  0x20   : > { %1465 = vmatprep.subr.bf16.mxu1 %v1464_v18  ;;  %v403_v53 = vld [vmem:[%s2236_s1 + $0x310] sm:$0xff]  ;;  %v404_v54 = vld [vmem:[%s2236_s1 + $0x318] sm:$0xff]  ;;  %v390_v56 = vld [vmem:[%s2236_s1 + $0x2a8] sm:$0xff]  ;;  %v1478_v61 = vpack.c.bf16 %v372_v52, %v371_v51 }
  0x21   : > { %1435 = vmatpush3.bf16.msra.mxu0 %v1434_v24  ;;  %v185_v57 = vld [vmem:[%s1747_s9 + $0x40] sm:$0xff]  ;;  %v187_v58 = vld [vmem:[%s1747_s9 + $0x50] sm:$0xff]  ;;  %v194_v59 = vld [vmem:[%s1747_s9 + $0x88] sm:$0xff]  ;;  %v1508_v62 = vpack.c.bf16 %v404_v54, %v403_v53  ;;  %v1480_v0 = vpack.c.bf16 %v390_v56, %v389_v55 }
  0x22   : > { %1437 = vmatprep.subr.bf16.mxu0 %v1436_v26  ;;  %v196_v60 = vld [vmem:[%s1747_s9 + $0x98] sm:$0xff]  ;;  %v405_v63 = vld [vmem:[%s2236_s1 + $0x320] sm:$0xff]  ;;  %v374_v2 = vld [vmem:[%s2236_s1 + $0x228] sm:$0xff] }
  0x23   : > { %1467 = vmatpush3.bf16.msra.mxu1 %v1466_v25  ;;  %v373_v1 = vld [vmem:[%s2236_s1 + $0x220] sm:$0xff]  ;;  %v406_v3 = vld [vmem:[%s2236_s1 + $0x328] sm:$0xff]  ;;  %v391_v4 = vld [vmem:[%s2236_s1 + $0x2b0] sm:$0xff] }
  0x24   : > { %1469 = vmatprep.subr.bf16.mxu1 %v1468_v30  ;;  %v392_v5 = vld [vmem:[%s2236_s1 + $0x2b8] sm:$0xff]  ;;  %v193_v6 = vld [vmem:[%s1747_s9 + $0x80] sm:$0xff]  ;;  %v195_v7 = vld [vmem:[%s1747_s9 + $0x90] sm:$0xff]  ;;  %v1482_v10 = vpack.c.bf16 %v374_v2, %v373_v1  ;;  %v1511_v11 = vpack.c.bf16 %v406_v3, %v405_v63 }
  0x25   : > { %1439 = vmatpush3.bf16.msra.mxu0 %v1438_v34  ;;  %v202_v8 = vld [vmem:[%s1747_s9 + $0xc8] sm:$0xff]  ;;  %v204_v9 = vld [vmem:[%s1747_s9 + $0xd8] sm:$0xff]  ;;  %v407_v12 = vld [vmem:[%s2236_s1 + $0x330] sm:$0xff]  ;;  %v1484_v13 = vpack.c.bf16 %v392_v5, %v391_v4 }
  0x26   : > { %1473 = vmatprep.subr.bf16.mxu0 %v1472_v36  ;;  %v375_v14 = vld [vmem:[%s2236_s1 + $0x230] sm:$0xff]  ;;  %v376_v15 = vld [vmem:[%s2236_s1 + $0x238] sm:$0xff]  ;;  %v393_v17 = vld [vmem:[%s2236_s1 + $0x2c0] sm:$0xff] }
  0x27   : > { %1471 = vmatpush3.bf16.msra.mxu1 %v1470_v35  ;;  %v408_v16 = vld [vmem:[%s2236_s1 + $0x338] sm:$0xff]  ;;  %v394_v18 = vld [vmem:[%s2236_s1 + $0x2c8] sm:$0xff]  ;;  %v201_v19 = vld [vmem:[%s1747_s9 + $0xc0] sm:$0xff]  ;;  %v1486_v23 = vpack.c.bf16 %v376_v15, %v375_v14 }
  0x28   : > { %1504 = vmatprep.subr.bf16.mxu1 %v1564_v48  ;;  %551 = vmatmul.mubr.f32.vlgmr.msra.gmra.mrb[0].mxu0 %v177_v43  ;;  %v203_v20 = vld [vmem:[%s1747_s9 + $0xd0] sm:$0xff]  ;;  %v210_v21 = vld [vmem:[%s1747_s9 + $0x108] sm:$0xff]  ;;  %v212_v22 = vld [vmem:[%s1747_s9 + $0x118] sm:$0xff]  ;;  %v1514_v24 = vpack.c.bf16 %v408_v16, %v407_v12  ;;  %v1488_v26 = vpack.c.bf16 %v394_v18, %v393_v17 }
  0x29   : > { %1475 = vmatpush3.bf16.msra.mxu0 %v1474_v44  ;;  %555 = vmatprep.mubr.f32.mxu0 %v186_v46  ;;  %v409_v25 = vld [vmem:[%s2236_s1 + $0x340] sm:$0xff]  ;;  %v378_v28 = vld [vmem:[%s2236_s1 + $0x248] sm:$0xff]  ;;  %v395_v30 = vld [vmem:[%s2236_s1 + $0x2d0] sm:$0xff] }
  0x2a   : > { %696 = vmatmul.mubr.f32.vlgmr.msra.gmra.mrb[0].mxu1 %v179_v45  ;;  %1477 = vmatprep.subr.bf16.mxu0 %v1476_v50  ;;  %v377_v27 = vld [vmem:[%s2236_s1 + $0x240] sm:$0xff]  ;;  %v410_v29 = vld [vmem:[%s2236_s1 + $0x348] sm:$0xff]  ;;  %v396_v31 = vld [vmem:[%s2236_s1 + $0x2d8] sm:$0xff] }
  0x2b   : > { %700 = vmatprep.mubr.f32.mxu1 %v188_v47  ;;  %1506 = vmatpush1.bf16.msra.mxu1 %v1505_v49  ;;  %v209_v32 = vld [vmem:[%s1747_s9 + $0x100] sm:$0xff]  ;;  %v211_v33 = vld [vmem:[%s1747_s9 + $0x110] sm:$0xff]  ;;  %v218_v34 = vld [vmem:[%s1747_s9 + $0x148] sm:$0xff]  ;;  %v1490_v35 = vpack.c.bf16 %v378_v28, %v377_v27  ;;  %v1517_v37 = vpack.c.bf16 %v410_v29, %v409_v25  ;;  %v1492_v38 = vpack.c.bf16 %v396_v31, %v395_v30 }
  0x2c   : > { %556 = vmatmul.mubr.f32.gmra.mrb[2].mxu0 %v185_v57  ;;  %1507 = vmatprep.subr.bf16.mxu1 %v1564_v48  ;;  %v220_v36 = vld [vmem:[%s1747_s9 + $0x158] sm:$0xff]  ;;  %v379_v39 = vld [vmem:[%s2236_s1 + $0x250] sm:$0xff]  ;;  %v217_v43 = vld [vmem:[%s1747_s9 + $0x140] sm:$0xff] }
  0x2d   : > { %560 = vmatprep.mubr.f32.mxu0 %v194_v59  ;;  %1479 = vmatpush3.bf16.msra.mxu0 %v1478_v61  ;;  %v380_v40 = vld [vmem:[%s2236_s1 + $0x258] sm:$0xff]  ;;  %v411_v41 = vld [vmem:[%s2236_s1 + $0x350] sm:$0xff]  ;;  %v397_v44 = vld [vmem:[%s2236_s1 + $0x2e0] sm:$0xff] }
  0x2e   : > { %701 = vmatmul.mubr.f32.gmra.mrb[2].mxu1 %v187_v58  ;;  %1481 = vmatprep.subr.bf16.mxu0 %v1480_v0  ;;  %v412_v42 = vld [vmem:[%s2236_s1 + $0x358] sm:$0xff]  ;;  %v219_v45 = vld [vmem:[%s1747_s9 + $0x150] sm:$0xff]  ;;  %v226_v46 = vld [vmem:[%s1747_s9 + $0x188] sm:$0xff]  ;;  %v1494_v47 = vpack.c.bf16 %v380_v40, %v379_v39 }
  0x2f   : > { %705 = vmatprep.mubr.f32.mxu1 %v196_v60  ;;  %1509 = vmatpush1.bf16.msra.mxu1 %v1508_v62  ;;  %v398_v49 = vld [vmem:[%s2236_s1 + $0x2e8] sm:$0xff]  ;;  %v228_v50 = vld [vmem:[%s1747_s9 + $0x198] sm:$0xff]  ;;  %v1520_v51 = vpack.c.bf16 %v412_v42, %v411_v41  ;;  %v381_v53 = vld [vmem:[%s2236_s1 + $0x260] sm:$0xff] }
  0x30   : > { %561 = vmatmul.mubr.f32.gmra.mrb[4].mxu0 %v193_v6  ;;  %1510 = vmatprep.subr.bf16.mxu1 %v1564_v48  ;;  %v1496_v52 = vpack.c.bf16 %v398_v49, %v397_v44  ;;  %v382_v54 = vld [vmem:[%s2236_s1 + $0x268] sm:$0xff]  ;;  %v413_v55 = vld [vmem:[%s2236_s1 + $0x360] sm:$0xff]  ;;  %v227_v58 = vld [vmem:[%s1747_s9 + $0x190] sm:$0xff] }
  0x31   : > { %565 = vmatprep.mubr.f32.mxu0 %v202_v8  ;;  %1483 = vmatpush3.bf16.msra.mxu0 %v1482_v10  ;;  %v414_v56 = vld [vmem:[%s2236_s1 + $0x368] sm:$0xff]  ;;  %v225_v57 = vld [vmem:[%s1747_s9 + $0x180] sm:$0xff]  ;;  %v236_v60 = vld [vmem:[%s1747_s9 + $0x1d8] sm:$0xff]  ;;  %v1498_v61 = vpack.c.bf16 %v382_v54, %v381_v53 }
  0x32   : > { %706 = vmatmul.mubr.f32.gmra.mrb[4].mxu1 %v195_v7  ;;  %1485 = vmatprep.subr.bf16.mxu0 %v1484_v13  ;;  %v234_v59 = vld [vmem:[%s1747_s9 + $0x1c8] sm:$0xff]  ;;  %v1523_v62 = vpack.c.bf16 %v414_v56, %v413_v55  ;;  %v415_v63 = vld [vmem:[%s2236_s1 + $0x370] sm:$0xff]  ;;  %v400_v1 = vld [vmem:[%s2236_s1 + $0x2f8] sm:$0xff] }
  0x33   : > { %710 = vmatprep.mubr.f32.mxu1 %v204_v9  ;;  %1512 = vmatpush1.bf16.msra.mxu1 %v1511_v11  ;;  %v399_v0 = vld [vmem:[%s2236_s1 + $0x2f0] sm:$0xff]  ;;  %v416_v2 = vld [vmem:[%s2236_s1 + $0x378] sm:$0xff]  ;;  %v233_v6 = vld [vmem:[%s1747_s9 + $0x1c0] sm:$0xff] }
  0x34   : > { %566 = vmatmul.mubr.f32.gmra.mrb[6].mxu0 %v201_v19  ;;  %1513 = vmatprep.subr.bf16.mxu1 %v1564_v48  ;;  %v1500_v3 = vpack.c.bf16 %v400_v1, %v399_v0  ;;  %v383_v4 = vld [vmem:[%s2236_s1 + $0x270] sm:$0xff]  ;;  %v384_v5 = vld [vmem:[%s2236_s1 + $0x278] sm:$0xff]  ;;  %v242_v8 = vld [vmem:[%s1747_s9 + $0x208] sm:$0xff]  ;;  %v1526_v11 = vpack.c.bf16 %v416_v2, %v415_v63 }
  0x35   : > { %570 = vmatprep.mubr.f32.mxu0 %v210_v21  ;;  %1487 = vmatpush3.bf16.msra.mxu0 %v1486_v23  ;;  %v235_v7 = vld [vmem:[%s1747_s9 + $0x1d0] sm:$0xff]  ;;  %v1502_v9 = vpack.c.bf16 %v384_v5, %v383_v4  ;;  %v244_v10 = vld [vmem:[%s1747_s9 + $0x218] sm:$0xff]  ;;  %v417_v12 = vld [vmem:[%s2236_s1 + $0x380] sm:$0xff] }
  0x36   : > { %711 = vmatmul.mubr.f32.gmra.mrb[6].mxu1 %v203_v20  ;;  %1489 = vmatprep.subr.bf16.mxu0 %v1488_v26  ;;  %v418_v13 = vld [vmem:[%s2236_s1 + $0x388] sm:$0xff]  ;;  %v241_v14 = vld [vmem:[%s1747_s9 + $0x200] sm:$0xff]  ;;  %v243_v15 = vld [vmem:[%s1747_s9 + $0x210] sm:$0xff] }
  0x37   : > { %715 = vmatprep.mubr.f32.mxu1 %v212_v22  ;;  %1515 = vmatpush1.bf16.msra.mxu1 %v1514_v24  ;;  %v250_v16 = vld [vmem:[%s1747_s9 + $0x248] sm:$0xff]  ;;  %v252_v17 = vld [vmem:[%s1747_s9 + $0x258] sm:$0xff]  ;;  %v1529_v18 = vpack.c.bf16 %v418_v13, %v417_v12  ;;  %v419_v19 = vld [vmem:[%s2236_s1 + $0x390] sm:$0xff] }
  0x38   : > { %571 = vmatmul.mubr.f32.gmra.mrb[8].mxu0 %v209_v32  ;;  %1516 = vmatprep.subr.bf16.mxu1 %v1564_v48  ;;  %v420_v20 = vld [vmem:[%s2236_s1 + $0x398] sm:$0xff]  ;;  %v249_v21 = vld [vmem:[%s1747_s9 + $0x240] sm:$0xff]  ;;  %v251_v22 = vld [vmem:[%s1747_s9 + $0x250] sm:$0xff] }
  0x39   : > { %575 = vmatprep.mubr.f32.mxu0 %v218_v34  ;;  %1491 = vmatpush3.bf16.msra.mxu0 %v1490_v35  ;;  %v258_v23 = vld [vmem:[%s1747_s9 + $0x288] sm:$0xff]  ;;  %v260_v24 = vld [vmem:[%s1747_s9 + $0x298] sm:$0xff]  ;;  %v1532_v25 = vpack.c.bf16 %v420_v20, %v419_v19  ;;  %v421_v26 = vld [vmem:[%s2236_s1 + $0x3a0] sm:$0xff] }
  0x3a   : > { %716 = vmatmul.mubr.f32.gmra.mrb[8].mxu1 %v211_v33  ;;  %1493 = vmatprep.subr.bf16.mxu0 %v1492_v38  ;;  %v422_v27 = vld [vmem:[%s2236_s1 + $0x3a8] sm:$0xff]  ;;  %v257_v28 = vld [vmem:[%s1747_s9 + $0x280] sm:$0xff]  ;;  %v259_v29 = vld [vmem:[%s1747_s9 + $0x290] sm:$0xff] }
  0x3b   : > { %720 = vmatprep.mubr.f32.mxu1 %v220_v36  ;;  %1518 = vmatpush1.bf16.msra.mxu1 %v1517_v37  ;;  %v266_v30 = vld [vmem:[%s1747_s9 + $0x2c8] sm:$0xff]  ;;  %v268_v31 = vld [vmem:[%s1747_s9 + $0x2d8] sm:$0xff]  ;;  %v1535_v32 = vpack.c.bf16 %v422_v27, %v421_v26  ;;  %v423_v33 = vld [vmem:[%s2236_s1 + $0x3b0] sm:$0xff] }
  0x3c   : > { %576 = vmatmul.mubr.f32.gmra.mrb[10].mxu0 %v217_v43  ;;  %1519 = vmatprep.subr.bf16.mxu1 %v1564_v48  ;;  %v424_v34 = vld [vmem:[%s2236_s1 + $0x3b8] sm:$0xff]  ;;  %v265_v35 = vld [vmem:[%s1747_s9 + $0x2c0] sm:$0xff]  ;;  %v267_v36 = vld [vmem:[%s1747_s9 + $0x2d0] sm:$0xff] }
  0x3d   : > { %580 = vmatprep.mubr.f32.mxu0 %v226_v46  ;;  %1495 = vmatpush3.bf16.msra.mxu0 %v1494_v47  ;;  %v274_v37 = vld [vmem:[%s1747_s9 + $0x308] sm:$0xff]  ;;  %v276_v38 = vld [vmem:[%s1747_s9 + $0x318] sm:$0xff]  ;;  %v1538_v39 = vpack.c.bf16 %v424_v34, %v423_v33  ;;  %v425_v40 = vld [vmem:[%s2236_s1 + $0x3c0] sm:$0xff] }
  0x3e   : > { %721 = vmatmul.mubr.f32.gmra.mrb[10].mxu1 %v219_v45  ;;  %1497 = vmatprep.subr.bf16.mxu0 %v1496_v52  ;;  %v426_v41 = vld [vmem:[%s2236_s1 + $0x3c8] sm:$0xff]  ;;  %v273_v42 = vld [vmem:[%s1747_s9 + $0x300] sm:$0xff]  ;;  %v275_v43 = vld [vmem:[%s1747_s9 + $0x310] sm:$0xff] }
  0x3f   : > { %725 = vmatprep.mubr.f32.mxu1 %v228_v50  ;;  %1521 = vmatpush1.bf16.msra.mxu1 %v1520_v51  ;;  %v282_v44 = vld [vmem:[%s1747_s9 + $0x348] sm:$0xff]  ;;  %v284_v45 = vld [vmem:[%s1747_s9 + $0x358] sm:$0xff]  ;;  %v1541_v46 = vpack.c.bf16 %v426_v41, %v425_v40  ;;  %v427_v47 = vld [vmem:[%s2236_s1 + $0x3d0] sm:$0xff] }
  0x40   : > { %581 = vmatmul.mubr.f32.gmra.mrb[12].mxu0 %v225_v57  ;;  %1522 = vmatprep.subr.bf16.mxu1 %v1564_v48  ;;  %v428_v49 = vld [vmem:[%s2236_s1 + $0x3d8] sm:$0xff]  ;;  %v281_v50 = vld [vmem:[%s1747_s9 + $0x340] sm:$0xff]  ;;  %v283_v51 = vld [vmem:[%s1747_s9 + $0x350] sm:$0xff] }
  0x41   : > { %585 = vmatprep.mubr.f32.mxu0 %v234_v59  ;;  %1499 = vmatpush3.bf16.msra.mxu0 %v1498_v61  ;;  %v290_v52 = vld [vmem:[%s1747_s9 + $0x388] sm:$0xff]  ;;  %v292_v53 = vld [vmem:[%s1747_s9 + $0x398] sm:$0xff]  ;;  %v1544_v54 = vpack.c.bf16 %v428_v49, %v427_v47  ;;  %v289_v55 = vld [vmem:[%s1747_s9 + $0x380] sm:$0xff]  ;;  %v1565_v59 = vmov 0.0  }
  0x42   : > { %726 = vmatmul.mubr.f32.gmra.mrb[12].mxu1 %v227_v58  ;;  %1501 = vmatprep.subr.bf16.mxu0 %v1500_v3  ;;  %v291_v56 = vld [vmem:[%s1747_s9 + $0x390] sm:$0xff]  ;;  %v298_v57 = vld [vmem:[%s1747_s9 + $0x3c8] sm:$0xff]  ;;  %v300_v58 = vld [vmem:[%s1747_s9 + $0x3d8] sm:$0xff] }
  0x43   : > { %730 = vmatprep.mubr.f32.mxu1 %v236_v60  ;;  %1524 = vmatpush1.bf16.msra.mxu1 %v1523_v62  ;;  %v297_v60 = vld [vmem:[%s1747_s9 + $0x3c0] sm:$0xff]  ;;  %v299_v61 = vld [vmem:[%s1747_s9 + $0x3d0] sm:$0xff]  ;;  %v182_v62 = vld [vmem:[%s1747_s9 + $0x28] sm:$0xff] }
  0x44   : > { %586 = vmatmul.mubr.f32.gmra.mrb[14].mxu0 %v233_v6  ;;  %1525 = vmatprep.subr.bf16.mxu1 %v1564_v48  ;;  %v184_v63 = vld [vmem:[%s1747_s9 + $0x38] sm:$0xff]  ;;  %v181_v0 = vld [vmem:[%s1747_s9 + $0x20] sm:$0xff]  ;;  %v190_v1 = vld [vmem:[%s1747_s9 + $0x68] sm:$0xff] }
  0x45   : > { %590 = vmatprep.mubr.f32.mxu0 %v242_v8  ;;  %1503 = vmatpush3.bf16.msra.mxu0 %v1502_v9  ;;  %v183_v2 = vld [vmem:[%s1747_s9 + $0x30] sm:$0xff]  ;;  %v192_v3 = vld [vmem:[%s1747_s9 + $0x78] sm:$0xff]  ;;  %v189_v4 = vld [vmem:[%s1747_s9 + $0x60] sm:$0xff] }
  0x46   : > { %731 = vmatmul.mubr.f32.gmra.mrb[14].mxu1 %v235_v7  ;;  %v198_v5 = vld [vmem:[%s1747_s9 + $0xa8] sm:$0xff]  ;;  %v191_v6 = vld [vmem:[%s1747_s9 + $0x70] sm:$0xff]  ;;  %v200_v7 = vld [vmem:[%s1747_s9 + $0xb8] sm:$0xff] }
  0x47   : > { %735 = vmatprep.mubr.f32.mxu1 %v244_v10  ;;  %1527 = vmatpush1.bf16.msra.mxu1 %v1526_v11  ;;  %v197_v8 = vld [vmem:[%s1747_s9 + $0xa0] sm:$0xff]  ;;  %v206_v9 = vld [vmem:[%s1747_s9 + $0xe8] sm:$0xff]  ;;  %v199_v10 = vld [vmem:[%s1747_s9 + $0xb0] sm:$0xff] }
  0x48   : > { %591 = vmatmul.mubr.f32.gmra.mrb[16].mxu0 %v241_v14  ;;  %1528 = vmatprep.subr.bf16.mxu1 %v1564_v48  ;;  %v208_v11 = vld [vmem:[%s1747_s9 + $0xf8] sm:$0xff]  ;;  %v205_v12 = vld [vmem:[%s1747_s9 + $0xe0] sm:$0xff]  ;;  %v214_v13 = vld [vmem:[%s1747_s9 + $0x128] sm:$0xff] }
  0x49   : > { %595 = vmatprep.mubr.f32.mxu0 %v250_v16  ;;  %v207_v14 = vld [vmem:[%s1747_s9 + $0xf0] sm:$0xff]  ;;  %v213_v16 = vld [vmem:[%s1747_s9 + $0x120] sm:$0xff]  ;;  %v224_v19 = vld [vmem:[%s1747_s9 + $0x178] sm:$0xff] }
  0x4a   : > { %736 = vmatmul.mubr.f32.gmra.mrb[16].mxu1 %v243_v15  ;;  %v216_v15 = vld [vmem:[%s1747_s9 + $0x138] sm:$0xff]  ;;  %v221_v20 = vld [vmem:[%s1747_s9 + $0x160] sm:$0xff]  ;;  %v231_v26 = vld [vmem:[%s1747_s9 + $0x1b0] sm:$0xff] }
  0x4b   : > { %740 = vmatprep.mubr.f32.mxu1 %v252_v17  ;;  %1530 = vmatpush1.bf16.msra.mxu1 %v1529_v18  ;;  %v222_v17 = vld [vmem:[%s1747_s9 + $0x168] sm:$0xff]  ;;  %v215_v18 = vld [vmem:[%s1747_s9 + $0x130] sm:$0xff]  ;;  %v240_v27 = vld [vmem:[%s1747_s9 + $0x1f8] sm:$0xff] }
  0x4c   : > { %596 = vmatmul.mubr.f32.gmra.mrb[18].mxu0 %v249_v21  ;;  %1531 = vmatprep.subr.bf16.mxu1 %v1564_v48  ;;  %v230_v21 = vld [vmem:[%s1747_s9 + $0x1a8] sm:$0xff]  ;;  %v247_v34 = vld [vmem:[%s1747_s9 + $0x230] sm:$0xff]  ;;  %v261_v40 = vld [vmem:[%s1747_s9 + $0x2a0] sm:$0xff] }
  0x4d   : > { %600 = vmatprep.mubr.f32.mxu0 %v258_v23  ;;  %v232_v23 = vld [vmem:[%s1747_s9 + $0x1b8] sm:$0xff]  ;;  %v254_v33 = vld [vmem:[%s1747_s9 + $0x268] sm:$0xff]  ;;  %v277_v49 = vld [vmem:[%s1747_s9 + $0x320] sm:$0xff] }
  0x4e   : > { %741 = vmatmul.mubr.f32.gmra.mrb[18].mxu1 %v251_v22  ;;  %v223_v22 = vld [vmem:[%s1747_s9 + $0x170] sm:$0xff]  ;;  %v270_v41 = vld [vmem:[%s1747_s9 + $0x2e8] sm:$0xff]  ;;  %v280_v47 = vld [vmem:[%s1747_s9 + $0x338] sm:$0xff] }
  0x4f   : > { %745 = vmatprep.mubr.f32.mxu1 %v260_v24  ;;  %1533 = vmatpush1.bf16.msra.mxu1 %v1532_v25  ;;  %v229_v24 = vld [vmem:[%s1747_s9 + $0x1a0] sm:$0xff]  ;;  %v238_v25 = vld [vmem:[%s1747_s9 + $0x1e8] sm:$0xff] }
  0x50   : > { %601 = vmatmul.mubr.f32.gmra.mrb[20].mxu0 %v257_v28  ;;  %1534 = vmatprep.subr.bf16.mxu1 %v1564_v48  ;;  %v237_v28 = vld [vmem:[%s1747_s9 + $0x1e0] sm:$0xff] }
  0x51   : > { %605 = vmatprep.mubr.f32.mxu0 %v266_v30  ;;  %v239_v30 = vld [vmem:[%s1747_s9 + $0x1f0] sm:$0xff] }
  0x52   : > { %746 = vmatmul.mubr.f32.gmra.mrb[20].mxu1 %v259_v29  ;;  %v246_v29 = vld [vmem:[%s1747_s9 + $0x228] sm:$0xff] }
  0x53   : > { %750 = vmatprep.mubr.f32.mxu1 %v268_v31  ;;  %1536 = vmatpush1.bf16.msra.mxu1 %v1535_v32  ;;  %v248_v31 = vld [vmem:[%s1747_s9 + $0x238] sm:$0xff]  ;;  %v245_v32 = vld [vmem:[%s1747_s9 + $0x220] sm:$0xff] }
  0x54   : > { %606 = vmatmul.mubr.f32.gmra.mrb[22].mxu0 %v265_v35  ;;  %1537 = vmatprep.subr.bf16.mxu1 %v1564_v48  ;;  %v256_v35 = vld [vmem:[%s1747_s9 + $0x278] sm:$0xff] }
  0x55   : > { %610 = vmatprep.mubr.f32.mxu0 %v274_v37  ;;  %v262_v37 = vld [vmem:[%s1747_s9 + $0x2a8] sm:$0xff] }
  0x56   : > { %751 = vmatmul.mubr.f32.gmra.mrb[22].mxu1 %v267_v36  ;;  %v253_v36 = vld [vmem:[%s1747_s9 + $0x260] sm:$0xff] }
  0x57   : > { %755 = vmatprep.mubr.f32.mxu1 %v276_v38  ;;  %1539 = vmatpush1.bf16.msra.mxu1 %v1538_v39  ;;  %v255_v38 = vld [vmem:[%s1747_s9 + $0x270] sm:$0xff]  ;;  %v264_v39 = vld [vmem:[%s1747_s9 + $0x2b8] sm:$0xff] }
  0x58   : > { %611 = vmatmul.mubr.f32.gmra.mrb[24].mxu0 %v273_v42  ;;  %1540 = vmatprep.subr.bf16.mxu1 %v1564_v48  ;;  %v263_v42 = vld [vmem:[%s1747_s9 + $0x2b0] sm:$0xff] }
  0x59   : > { %615 = vmatprep.mubr.f32.mxu0 %v282_v44  ;;  %v269_v44 = vld [vmem:[%s1747_s9 + $0x2e0] sm:$0xff] }
  0x5a   : > { %756 = vmatmul.mubr.f32.gmra.mrb[24].mxu1 %v275_v43  ;;  %v272_v43 = vld [vmem:[%s1747_s9 + $0x2f8] sm:$0xff] }
  0x5b   : > { %760 = vmatprep.mubr.f32.mxu1 %v284_v45  ;;  %1542 = vmatpush1.bf16.msra.mxu1 %v1541_v46  ;;  %v278_v45 = vld [vmem:[%s1747_s9 + $0x328] sm:$0xff]  ;;  %v271_v46 = vld [vmem:[%s1747_s9 + $0x2f0] sm:$0xff] }
  0x5c   : > { %616 = vmatmul.mubr.f32.gmra.mrb[26].mxu0 %v281_v50  ;;  %1543 = vmatprep.subr.bf16.mxu1 %v1564_v48  ;;  %v429_v48 = vld [vmem:[%s2236_s1 + $0x3e0] sm:$0xff]  ;;  %v286_v50 = vld [vmem:[%s1747_s9 + $0x368] sm:$0xff] }
  0x5d   : > { %620 = vmatprep.mubr.f32.mxu0 %v290_v52  ;;  %v288_v52 = vld [vmem:[%s1747_s9 + $0x378] sm:$0xff] }
  0x5e   : > { %761 = vmatmul.mubr.f32.gmra.mrb[26].mxu1 %v283_v51  ;;  %v279_v51 = vld [vmem:[%s1747_s9 + $0x330] sm:$0xff] }
  0x5f   : > { %765 = vmatprep.mubr.f32.mxu1 %v292_v53  ;;  %1545 = vmatpush1.bf16.msra.mxu1 %v1544_v54  ;;  %v285_v53 = vld [vmem:[%s1747_s9 + $0x360] sm:$0xff]  ;;  %v294_v54 = vld [vmem:[%s1747_s9 + $0x3a8] sm:$0xff] }
  0x60   : > { %621 = vmatmul.mubr.f32.gmra.mrb[28].mxu0 %v289_v55  ;;  %977 = vmatprep.subr.mxu1 %v1565_v59  ;;  %v287_v55 = vld [vmem:[%s1747_s9 + $0x370] sm:$0xff] }
  0x61   : > { %625 = vmatprep.mubr.f32.mxu0 %v298_v57  ;;  %v293_v57 = vld [vmem:[%s1747_s9 + $0x3a0] sm:$0xff]  ;;  %v295_v59 = vld [vmem:[%s1747_s9 + $0x3b0] sm:$0xff] }
  0x62   : > { %766 = vmatmul.mubr.f32.gmra.mrb[28].mxu1 %v291_v56  ;;  %v296_v56 = vld [vmem:[%s1747_s9 + $0x3b8] sm:$0xff] }
  0x63   : > { %770 = vmatprep.mubr.f32.mxu1 %v300_v58  ;;  %978 = vmatpush1.msra.mxu1 %v429_v48  ;;  %v302_v58 = vld [vmem:[%s1747_s9 + $0x3e8] sm:$0xff]  ;;  %v304_v48 = vld [vmem:[%s1747_s9 + $0x3f8] sm:$0xff] }
  0x64   : > { %626 = vmatmul.mubr.f32.gmra.mrb[30].mxu0 %v297_v60  ;;  %v301_v60 = vld [vmem:[%s1747_s9 + $0x3e0] sm:$0xff] }
  0x65   : > { %840 = vmatprep.mubr.f32.mxu0 %v182_v62 }
  0x66   : > { %771 = vmatmul.mubr.f32.gmra.mrb[30].mxu1 %v299_v61  ;;  %v303_v61 = vld [vmem:[%s1747_s9 + $0x3f0] sm:$0xff]  ;;  %s1147_s9 = sshll.u32 %s2240_s11, 3 }
  0x67   : > { %1149 = vmatprep.mubr.msk.f32.mxu1 %vm437_vm0, %v184_v63  ;;  %v2144_v63 = vld [vmem:[%s2237_s2] ss:$0 sm:$0xff]  ;;  %s2199_s28 = scalar_lea.vmem %s2238_s3, %s1147_s9 }
  0x68   : > { %841 = vmatmul.mubr.f32.vlgmr.msra.gmra.mrb[32].mxu0 %v181_v0 }
  0x69   : > { %845 = vmatprep.mubr.f32.mxu0 %v190_v1 }
  0x6a   : > { %986 = vmatmul.mubr.f32.vlgmr.msra.gmra.mrb[32].mxu1 %v183_v2 }
  0x6b   : > { %1150 = vmatprep.mubr.msk.f32.mxu1 %vm437_vm0, %v192_v3 }
  0x6c   : > { %846 = vmatmul.mubr.f32.gmra.mrb[34].mxu0 %v189_v4 }
  0x6d   : > { %850 = vmatprep.mubr.f32.mxu0 %v198_v5 }
  0x6e   : > { %991 = vmatmul.mubr.f32.gmra.mrb[34].mxu1 %v191_v6 }
  0x6f   : > { %1151 = vmatprep.mubr.msk.f32.mxu1 %vm437_vm0, %v200_v7 }
  0x70   : > { %851 = vmatmul.mubr.f32.gmra.mrb[36].mxu0 %v197_v8 }
  0x71   : > { %855 = vmatprep.mubr.f32.mxu0 %v206_v9 }
  0x72   : > { %996 = vmatmul.mubr.f32.gmra.mrb[36].mxu1 %v199_v10 }
  0x73   : > { %1152 = vmatprep.mubr.msk.f32.mxu1 %vm437_vm0, %v208_v11 }
  0x74   : > { %856 = vmatmul.mubr.f32.gmra.mrb[38].mxu0 %v205_v12 }
  0x75   : > { %860 = vmatprep.mubr.f32.mxu0 %v214_v13 }
  0x76   : > { %1001 = vmatmul.mubr.f32.gmra.mrb[38].mxu1 %v207_v14 }
  0x77   : > { %1153 = vmatprep.mubr.msk.f32.mxu1 %vm437_vm0, %v216_v15 }
  0x78   : > { %861 = vmatmul.mubr.f32.gmra.mrb[40].mxu0 %v213_v16 }
  0x79   : > { %865 = vmatprep.mubr.f32.mxu0 %v222_v17 }
  0x7a   : > { %1006 = vmatmul.mubr.f32.gmra.mrb[40].mxu1 %v215_v18 }
  0x7b   : > { %1154 = vmatprep.mubr.msk.f32.mxu1 %vm437_vm0, %v224_v19 }
  0x7c   : > { %866 = vmatmul.mubr.f32.gmra.mrb[42].mxu0 %v221_v20 }
  0x7d   : > { %870 = vmatprep.mubr.f32.mxu0 %v230_v21 }
  0x7e   : > { %1011 = vmatmul.mubr.f32.gmra.mrb[42].mxu1 %v223_v22 }
  0x7f   : > { %1155 = vmatprep.mubr.msk.f32.mxu1 %vm437_vm0, %v232_v23 }
  0x80   : > { %871 = vmatmul.mubr.f32.gmra.mrb[44].mxu0 %v229_v24 }
  0x81   : > { %875 = vmatprep.mubr.f32.mxu0 %v238_v25 }
  0x82   : > { %1016 = vmatmul.mubr.f32.gmra.mrb[44].mxu1 %v231_v26 }
  0x83   : > { %1156 = vmatprep.mubr.msk.f32.mxu1 %vm437_vm0, %v240_v27 }
  0x84   : > { %876 = vmatmul.mubr.f32.gmra.mrb[46].mxu0 %v237_v28 }
  0x85   : > { %880 = vmatprep.mubr.f32.mxu0 %v246_v29 }
  0x86   : > { %1021 = vmatmul.mubr.f32.gmra.mrb[46].mxu1 %v239_v30 }
  0x87   : > { %1157 = vmatprep.mubr.msk.f32.mxu1 %vm437_vm0, %v248_v31 }
  0x88   : > { %881 = vmatmul.mubr.f32.gmra.mrb[48].mxu0 %v245_v32 }
  0x89   : > { %885 = vmatprep.mubr.f32.mxu0 %v254_v33 }
  0x8a   : > { %1026 = vmatmul.mubr.f32.gmra.mrb[48].mxu1 %v247_v34 }
  0x8b   : > { %1158 = vmatprep.mubr.msk.f32.mxu1 %vm437_vm0, %v256_v35 }
  0x8c   : > { %886 = vmatmul.mubr.f32.gmra.mrb[50].mxu0 %v253_v36 }
  0x8d   : > { %890 = vmatprep.mubr.f32.mxu0 %v262_v37 }
  0x8e   : > { %1031 = vmatmul.mubr.f32.gmra.mrb[50].mxu1 %v255_v38 }
  0x8f   : > { %1159 = vmatprep.mubr.msk.f32.mxu1 %vm437_vm0, %v264_v39 }
  0x90   : > { %891 = vmatmul.mubr.f32.gmra.mrb[52].mxu0 %v261_v40 }
  0x91   : > { %895 = vmatprep.mubr.f32.mxu0 %v270_v41 }
  0x92   : > { %1036 = vmatmul.mubr.f32.gmra.mrb[52].mxu1 %v263_v42 }
  0x93   : > { %1160 = vmatprep.mubr.msk.f32.mxu1 %vm437_vm0, %v272_v43 }
  0x94   : > { %896 = vmatmul.mubr.f32.gmra.mrb[54].mxu0 %v269_v44 }
  0x95   : > { %900 = vmatprep.mubr.f32.mxu0 %v278_v45 }
  0x96   : > { %1041 = vmatmul.mubr.f32.gmra.mrb[54].mxu1 %v271_v46 }
  0x97   : > { %1161 = vmatprep.mubr.msk.f32.mxu1 %vm437_vm0, %v280_v47 }
  0x98   : > { %901 = vmatmul.mubr.f32.gmra.mrb[56].mxu0 %v277_v49 }
  0x99   : > { %905 = vmatprep.mubr.f32.mxu0 %v286_v50 }
  0x9a   : > { %1046 = vmatmul.mubr.f32.gmra.mrb[56].mxu1 %v279_v51 }
  0x9b   : > { %1162 = vmatprep.mubr.msk.f32.mxu1 %vm437_vm0, %v288_v52 }
  0x9c   : > { %906 = vmatmul.mubr.f32.gmra.mrb[58].mxu0 %v285_v53 }
  0x9d   : > { %910 = vmatprep.mubr.f32.mxu0 %v294_v54 }
  0x9e   : > { %1051 = vmatmul.mubr.f32.gmra.mrb[58].mxu1 %v287_v55 }
  0x9f   : > { %1163 = vmatprep.mubr.msk.f32.mxu1 %vm437_vm0, %v296_v56 }
  0xa0   : > { %911 = vmatmul.mubr.f32.gmra.mrb[60].mxu0 %v293_v57 }
  0xa1   : > { %915 = vmatprep.mubr.f32.mxu0 %v302_v58 }
  0xa2   : > { %1056 = vmatmul.mubr.f32.gmra.mrb[60].mxu1 %v295_v59 }
  0xa3   : > { %1164 = vmatprep.mubr.msk.f32.mxu1 %vm437_vm0, %v304_v48 }
  0xa4   : > { %916 = vmatmul.mubr.f32.gmra.mrb[62].mxu0 %v301_v60 }
  0xa6   : > { %1061 = vmatmul.mubr.f32.gmra.mrb[62].mxu1 %v303_v61 }
  0xfb   : > { %v1200_v62 = vpop.f32.mrb[0].mxu0 }
  0xfc   : > { %v1201_v0 = vpop.f32.mrb[1].mxu0 }
  0xfd   : > { %v1280_v1 = vpop.f32.mrb[0].mxu1  ;;  %v1202_v2 = vadd.f32 %v1201_v0, %v1200_v62 }
  0xfe   : > { %v1281_v3 = vpop.f32.mrb[1].mxu1 }
  0xff   : > { %v1282_v4 = vadd.f32 %v1281_v3, %v1280_v1  ;;  %v553_v5 = vadd.f32 %v1202_v2, %v2144_v63  ;;  %v1203_v6 = vpop.f32.mrb[2].mxu0 }
 0x100   : > { %v1204_v7 = vpop.f32.mrb[3].mxu0 }
 0x101   : > { %v1283_v8 = vpop.f32.mrb[2].mxu1  ;;  %v2147_v9 = vadd.f32 %v1282_v4, %v553_v5  ;;  %v1205_v10 = vadd.f32 %v1204_v7, %v1203_v6 }
 0x102   : > { %v1284_v11 = vpop.f32.mrb[3].mxu1 }
 0x103   : > { %v1285_v12 = vadd.f32 %v1284_v11, %v1283_v8  ;;  %v558_v13 = vadd.f32 %v1205_v10, %v2144_v63  ;;  %v1206_v14 = vpop.f32.mrb[4].mxu0 }
 0x104   : > { %v1207_v15 = vpop.f32.mrb[5].mxu0 }
 0x105   : > { %v1286_v16 = vpop.f32.mrb[4].mxu1  ;;  %v2150_v17 = vadd.f32 %v1285_v12, %v558_v13  ;;  %v1208_v18 = vadd.f32 %v1207_v15, %v1206_v14 }
 0x106   : > { %v1287_v19 = vpop.f32.mrb[5].mxu1 }
 0x107   : > { %v1288_v20 = vadd.f32 %v1287_v19, %v1286_v16  ;;  %v563_v21 = vadd.f32 %v1208_v18, %v2144_v63  ;;  %v1209_v22 = vpop.f32.mrb[6].mxu0 }
 0x108   : > { %v1210_v23 = vpop.f32.mrb[7].mxu0 }
 0x109   : > { %v1289_v24 = vpop.f32.mrb[6].mxu1  ;;  %v2153_v25 = vadd.f32 %v1288_v20, %v563_v21  ;;  %v1211_v26 = vadd.f32 %v1210_v23, %v1209_v22 }
 0x10a   : > { %v1290_v27 = vpop.f32.mrb[7].mxu1 }
 0x10b   : > { %v1291_v28 = vadd.f32 %v1290_v27, %v1289_v24  ;;  %v568_v29 = vadd.f32 %v1211_v26, %v2144_v63  ;;  %v1212_v30 = vpop.f32.mrb[8].mxu0 }
 0x10c   : > { %v1213_v31 = vpop.f32.mrb[9].mxu0 }
 0x10d   : > { %v1292_v32 = vpop.f32.mrb[8].mxu1  ;;  %v2156_v33 = vadd.f32 %v1291_v28, %v568_v29  ;;  %v1214_v34 = vadd.f32 %v1213_v31, %v1212_v30 }
 0x10e   : > { %v1293_v35 = vpop.f32.mrb[9].mxu1 }
 0x10f   : > { %v1294_v36 = vadd.f32 %v1293_v35, %v1292_v32  ;;  %v573_v37 = vadd.f32 %v1214_v34, %v2144_v63  ;;  %v1215_v38 = vpop.f32.mrb[10].mxu0 }
 0x110   : > { %v1216_v39 = vpop.f32.mrb[11].mxu0 }
 0x111   : > { %v1295_v40 = vpop.f32.mrb[10].mxu1  ;;  %v2159_v41 = vadd.f32 %v1294_v36, %v573_v37  ;;  %v1217_v42 = vadd.f32 %v1216_v39, %v1215_v38 }
 0x112   : > { %v1296_v43 = vpop.f32.mrb[11].mxu1 }
 0x113   : > { %v1297_v44 = vadd.f32 %v1296_v43, %v1295_v40  ;;  %v578_v45 = vadd.f32 %v1217_v42, %v2144_v63  ;;  %v1218_v46 = vpop.f32.mrb[12].mxu0 }
 0x114   : > { %v1219_v47 = vpop.f32.mrb[13].mxu0 }
 0x115   : > { %v1298_v49 = vpop.f32.mrb[12].mxu1  ;;  %v2162_v50 = vadd.f32 %v1297_v44, %v578_v45  ;;  %v1220_v51 = vadd.f32 %v1219_v47, %v1218_v46 }
 0x116   : > { %v1299_v52 = vpop.f32.mrb[13].mxu1 }
 0x117   : > { %v1300_v53 = vadd.f32 %v1299_v52, %v1298_v49  ;;  %v583_v54 = vadd.f32 %v1220_v51, %v2144_v63  ;;  %v1221_v55 = vpop.f32.mrb[14].mxu0 }
 0x118   : > { %v1222_v56 = vpop.f32.mrb[15].mxu0 }
 0x119   : > { %v1301_v57 = vpop.f32.mrb[14].mxu1  ;;  %v2165_v58 = vadd.f32 %v1300_v53, %v583_v54  ;;  %v1223_v59 = vadd.f32 %v1222_v56, %v1221_v55 }
 0x11a   : > { %v1302_v48 = vpop.f32.mrb[15].mxu1 }
 0x11b   : > { %v1303_v60 = vadd.f32 %v1302_v48, %v1301_v57  ;;  %v588_v61 = vadd.f32 %v1223_v59, %v2144_v63  ;;  %v1224_v62 = vpop.f32.mrb[16].mxu0 }
 0x11c   : > { %v1225_v0 = vpop.f32.mrb[17].mxu0 }
 0x11d   : > { %v1304_v1 = vpop.f32.mrb[16].mxu1  ;;  %v2168_v2 = vadd.f32 %v1303_v60, %v588_v61  ;;  %v1226_v3 = vadd.f32 %v1225_v0, %v1224_v62 }
 0x11e   : > { %v1305_v4 = vpop.f32.mrb[17].mxu1 }
 0x11f   : > { %v1306_v5 = vadd.f32 %v1305_v4, %v1304_v1  ;;  %v593_v6 = vadd.f32 %v1226_v3, %v2144_v63  ;;  %v1227_v7 = vpop.f32.mrb[18].mxu0 }
 0x120   : > { %v1228_v8 = vpop.f32.mrb[19].mxu0 }
 0x121   : > { %v1307_v10 = vpop.f32.mrb[18].mxu1  ;;  %v2171_v11 = vadd.f32 %v1306_v5, %v593_v6  ;;  %v1229_v12 = vadd.f32 %v1228_v8, %v1227_v7 }
 0x122   : > { %v1308_v13 = vpop.f32.mrb[19].mxu1 }
 0x123   : > { %v1309_v14 = vadd.f32 %v1308_v13, %v1307_v10  ;;  %v598_v15 = vadd.f32 %v1229_v12, %v2144_v63  ;;  %v1230_v16 = vpop.f32.mrb[20].mxu0 }
 0x124   : > { %v1231_v18 = vpop.f32.mrb[21].mxu0 }
 0x125   : > { %v1310_v19 = vpop.f32.mrb[20].mxu1  ;;  %v2174_v20 = vadd.f32 %v1309_v14, %v598_v15  ;;  %v1232_v21 = vadd.f32 %v1231_v18, %v1230_v16 }
 0x126   : > { %v1311_v22 = vpop.f32.mrb[21].mxu1 }
 0x127   : > { %v1312_v23 = vadd.f32 %v1311_v22, %v1310_v19  ;;  %v603_v24 = vadd.f32 %v1232_v21, %v2144_v63  ;;  %v1233_v26 = vpop.f32.mrb[22].mxu0 }
 0x128   : > { %v1234_v27 = vpop.f32.mrb[23].mxu0 }
 0x129   : > { %v1313_v28 = vpop.f32.mrb[22].mxu1  ;;  %v2177_v29 = vadd.f32 %v1312_v23, %v603_v24  ;;  %v1235_v30 = vadd.f32 %v1234_v27, %v1233_v26 }
 0x12a   : > { %v1314_v31 = vpop.f32.mrb[23].mxu1 }
 0x12b   : > { %v1315_v32 = vadd.f32 %v1314_v31, %v1313_v28  ;;  %v608_v34 = vadd.f32 %v1235_v30, %v2144_v63  ;;  %v1236_v35 = vpop.f32.mrb[24].mxu0 }
 0x12c   : > { %v1237_v36 = vpop.f32.mrb[25].mxu0 }
 0x12d   : > { %v1316_v37 = vpop.f32.mrb[24].mxu1  ;;  %v2180_v38 = vadd.f32 %v1315_v32, %v608_v34  ;;  %v1238_v39 = vadd.f32 %v1237_v36, %v1236_v35 }
 0x12e   : > { %v1317_v40 = vpop.f32.mrb[25].mxu1 }
 0x12f   : > { %v1318_v42 = vadd.f32 %v1317_v40, %v1316_v37  ;;  %v613_v43 = vadd.f32 %v1238_v39, %v2144_v63  ;;  %v1239_v44 = vpop.f32.mrb[26].mxu0 }
 0x130   : > { %v1240_v45 = vpop.f32.mrb[27].mxu0 }
 0x131   : > { %v1319_v46 = vpop.f32.mrb[26].mxu1  ;;  %v2183_v47 = vadd.f32 %v1318_v42, %v613_v43  ;;  %v1241_v49 = vadd.f32 %v1240_v45, %v1239_v44 }
 0x132   : > { %v1320_v51 = vpop.f32.mrb[27].mxu1 }
 0x133   : > { %v1321_v52 = vadd.f32 %v1320_v51, %v1319_v46  ;;  %v618_v53 = vadd.f32 %v1241_v49, %v2144_v63  ;;  %v1242_v54 = vpop.f32.mrb[28].mxu0 }
 0x134   : > { %v1243_v55 = vpop.f32.mrb[29].mxu0 }
 0x135   : > { %v1322_v56 = vpop.f32.mrb[28].mxu1  ;;  %v2186_v57 = vadd.f32 %v1321_v52, %v618_v53  ;;  %v1244_v59 = vadd.f32 %v1243_v55, %v1242_v54 }
 0x136   : > { %v1323_v48 = vpop.f32.mrb[29].mxu1 }
 0x137   : > { %v1324_v60 = vadd.f32 %v1323_v48, %v1322_v56  ;;  %v623_v61 = vadd.f32 %v1244_v59, %v2144_v63  ;;  %v1245_v62 = vpop.f32.mrb[30].mxu0 }
 0x138   : > { %v1246_v0 = vpop.f32.mrb[31].mxu0 }
 0x139   : > { %v1325_v1 = vpop.f32.mrb[30].mxu1  ;;  %v2189_v3 = vadd.f32 %v1324_v60, %v623_v61  ;;  %v1247_v4 = vadd.f32 %v1246_v0, %v1245_v62 }
 0x13a   : > { %v1326_v5 = vpop.f32.mrb[31].mxu1 }
 0x13b   : > { %v1327_v6 = vadd.f32 %v1326_v5, %v1325_v1  ;;  %v628_v7 = vadd.f32 %v1247_v4, %v2144_v63  ;;  %v1360_v8 = vpop.f32.mrb[32].mxu0 }
 0x13c   : > { %v1361_v10 = vpop.f32.mrb[33].mxu0 }
 0x13d   : > { %v987_v12 = vpop.f32.mrb[32].mxu1  ;;  %v2192_v13 = vadd.f32 %v1327_v6, %v628_v7  ;;  %v1362_v14 = vadd.f32 %v1361_v10, %v1360_v8 }
 0x13e   : > { %v989_v15 = vpop.f32.mrb[33].mxu1 }
 0x13f   : > { %v1363_v16 = vpop.f32.mrb[34].mxu0  ;;  %v843_v18 = vadd.f32 %v1362_v14, %v2147_v9 }
 0x140   : > { %v1364_v19 = vpop.f32.mrb[35].mxu0 }
 0x141   : > { %v992_v63 = vpop.f32.mrb[34].mxu1  ;;  %v1365_v21 = vadd.f32 %v1364_v19, %v1363_v16  ;;  %v988_v22 = vadd.f32 %v987_v12, %v843_v18 }
 0x142   : > { %v994_v23 = vpop.f32.mrb[35].mxu1 }
 0x143   : > { %1066 = vst [vmem:[%s2199_s28] sm:$0xff] %v988_v22  ;;  %v1366_v24 = vpop.f32.mrb[36].mxu0  ;;  %v848_v26 = vadd.f32 %v1365_v21, %v2150_v17 }
 0x144   : > { %v1367_v27 = vpop.f32.mrb[37].mxu0 }
 0x145   : > { %v997_v28 = vpop.f32.mrb[36].mxu1  ;;  %v1368_v9 = vadd.f32 %v1367_v27, %v1366_v24  ;;  %v993_v30 = vadd.f32 %v992_v63, %v848_v26 }
 0x146   : > { %v999_v31 = vpop.f32.mrb[37].mxu1 }
 0x147   : > { %1067 = vst [vmem:[%s2199_s28 + $0x8] sm:$0xff] %v993_v30  ;;  %v1369_v32 = vpop.f32.mrb[38].mxu0  ;;  %v853_v34 = vadd.f32 %v1368_v9, %v2153_v25 }
 0x148   : > { %v1370_v35 = vpop.f32.mrb[39].mxu0 }
 0x149   : > { %v1002_v36 = vpop.f32.mrb[38].mxu1  ;;  %v1371_v37 = vadd.f32 %v1370_v35, %v1369_v32  ;;  %v998_v39 = vadd.f32 %v997_v28, %v853_v34 }
 0x14a   : > { %v1004_v40 = vpop.f32.mrb[39].mxu1 }
 0x14b   : > { %1068 = vst [vmem:[%s2199_s28 + $0x10] sm:$0xff] %v998_v39  ;;  %v1372_v42 = vpop.f32.mrb[40].mxu0  ;;  %v858_v17 = vadd.f32 %v1371_v37, %v2156_v33 }
 0x14c   : > { %v1373_v43 = vpop.f32.mrb[41].mxu0 }
 0x14d   : > { %v1007_v44 = vpop.f32.mrb[40].mxu1  ;;  %v1374_v45 = vadd.f32 %v1373_v43, %v1372_v42  ;;  %v1003_v46 = vadd.f32 %v1002_v36, %v858_v17 }
 0x14e   : > { %v1009_v49 = vpop.f32.mrb[41].mxu1 }
 0x14f   : > { %1069 = vst [vmem:[%s2199_s28 + $0x18] sm:$0xff] %v1003_v46  ;;  %v1375_v51 = vpop.f32.mrb[42].mxu0  ;;  %v863_v25 = vadd.f32 %v1374_v45, %v2159_v41 }
 0x150   : > { %v1376_v52 = vpop.f32.mrb[43].mxu0 }
 0x151   : > { %v1012_v53 = vpop.f32.mrb[42].mxu1  ;;  %v1377_v54 = vadd.f32 %v1376_v52, %v1375_v51  ;;  %v1008_v55 = vadd.f32 %v1007_v44, %v863_v25 }
 0x152   : > { %v1014_v56 = vpop.f32.mrb[43].mxu1 }
 0x153   : > { %1070 = vst [vmem:[%s2199_s28 + $0x20] sm:$0xff] %v1008_v55  ;;  %v1378_v59 = vpop.f32.mrb[44].mxu0  ;;  %v868_v33 = vadd.f32 %v1377_v54, %v2162_v50 }
 0x154   : > { %v1379_v48 = vpop.f32.mrb[45].mxu0 }
 0x155   : > { %v1017_v60 = vpop.f32.mrb[44].mxu1  ;;  %v1380_v61 = vadd.f32 %v1379_v48, %v1378_v59  ;;  %v1013_v62 = vadd.f32 %v1012_v53, %v868_v33 }
 0x156   : > { %v1019_v0 = vpop.f32.mrb[45].mxu1 }
 0x157   : > { %1071 = vst [vmem:[%s2199_s28 + $0x28] sm:$0xff] %v1013_v62  ;;  %v1381_v1 = vpop.f32.mrb[46].mxu0  ;;  %v873_v41 = vadd.f32 %v1380_v61, %v2165_v58 }
 0x158   : > { %v1382_v4 = vpop.f32.mrb[47].mxu0 }
 0x159   : > { %v1022_v5 = vpop.f32.mrb[46].mxu1  ;;  %v1383_v6 = vadd.f32 %v1382_v4, %v1381_v1  ;;  %v1018_v7 = vadd.f32 %v1017_v60, %v873_v41 }
 0x15a   : > { %v1024_v8 = vpop.f32.mrb[47].mxu1 }
 0x15b   : > { %1072 = vst [vmem:[%s2199_s28 + $0x30] sm:$0xff] %v1018_v7  ;;  %v1384_v10 = vpop.f32.mrb[48].mxu0  ;;  %v878_v50 = vadd.f32 %v1383_v6, %v2168_v2 }
 0x15c   : > { %v1385_v12 = vpop.f32.mrb[49].mxu0 }
 0x15d   : > { %v1027_v14 = vpop.f32.mrb[48].mxu1  ;;  %v1386_v15 = vadd.f32 %v1385_v12, %v1384_v10  ;;  %v1023_v16 = vadd.f32 %v1022_v5, %v878_v50 }
 0x15e   : > { %v1029_v18 = vpop.f32.mrb[49].mxu1 }
 0x15f   : > { %1073 = vst [vmem:[%s2199_s28 + $0x38] sm:$0xff] %v1023_v16  ;;  %v1387_v19 = vpop.f32.mrb[50].mxu0  ;;  %v883_v58 = vadd.f32 %v1386_v15, %v2171_v11 }
 0x160   : > { %v1388_v63 = vpop.f32.mrb[51].mxu0 }
 0x161   : > { %v1032_v21 = vpop.f32.mrb[50].mxu1  ;;  %v1389_v22 = vadd.f32 %v1388_v63, %v1387_v19  ;;  %v1028_v23 = vadd.f32 %v1027_v14, %v883_v58 }
 0x162   : > { %v1034_v24 = vpop.f32.mrb[51].mxu1 }
 0x163   : > { %1074 = vst [vmem:[%s2199_s28 + $0x40] sm:$0xff] %v1028_v23  ;;  %v1390_v26 = vpop.f32.mrb[52].mxu0  ;;  %v888_v2 = vadd.f32 %v1389_v22, %v2174_v20 }
 0x164   : > { %v1391_v27 = vpop.f32.mrb[53].mxu0 }
 0x165   : > { %v1037_v28 = vpop.f32.mrb[52].mxu1  ;;  %v1392_v9 = vadd.f32 %v1391_v27, %v1390_v26  ;;  %v1033_v30 = vadd.f32 %v1032_v21, %v888_v2 }
 0x166   : > { %v1039_v31 = vpop.f32.mrb[53].mxu1 }
 0x167   : > { %1075 = vst [vmem:[%s2199_s28 + $0x48] sm:$0xff] %v1033_v30  ;;  %v1393_v32 = vpop.f32.mrb[54].mxu0  ;;  %v893_v11 = vadd.f32 %v1392_v9, %v2177_v29 }
 0x168   : > { %v1394_v34 = vpop.f32.mrb[55].mxu0 }
 0x169   : > { %v1042_v35 = vpop.f32.mrb[54].mxu1  ;;  %v1395_v36 = vadd.f32 %v1394_v34, %v1393_v32  ;;  %v1038_v37 = vadd.f32 %v1037_v28, %v893_v11 }
 0x16a   : > { %v1044_v39 = vpop.f32.mrb[55].mxu1 }
 0x16b   : > { %1076 = vst [vmem:[%s2199_s28 + $0x50] sm:$0xff] %v1038_v37  ;;  %v1396_v40 = vpop.f32.mrb[56].mxu0  ;;  %v898_v20 = vadd.f32 %v1395_v36, %v2180_v38 }
 0x16c   : > { %v1397_v42 = vpop.f32.mrb[57].mxu0 }
 0x16d   : > { %v1047_v17 = vpop.f32.mrb[56].mxu1  ;;  %v1398_v43 = vadd.f32 %v1397_v42, %v1396_v40  ;;  %v1043_v44 = vadd.f32 %v1042_v35, %v898_v20 }
 0x16e   : > { %v1049_v45 = vpop.f32.mrb[57].mxu1 }
 0x16f   : > { %1077 = vst [vmem:[%s2199_s28 + $0x58] sm:$0xff] %v1043_v44  ;;  %v1399_v46 = vpop.f32.mrb[58].mxu0  ;;  %v903_v29 = vadd.f32 %v1398_v43, %v2183_v47 }
 0x170   : > { %v1400_v49 = vpop.f32.mrb[59].mxu0 }
 0x171   : > { %v1052_v51 = vpop.f32.mrb[58].mxu1  ;;  %v1401_v25 = vadd.f32 %v1400_v49, %v1399_v46  ;;  %v1048_v52 = vadd.f32 %v1047_v17, %v903_v29 }
 0x172   : > { %v1054_v53 = vpop.f32.mrb[59].mxu1 }
 0x173   : > { %1078 = vst [vmem:[%s2199_s28 + $0x60] sm:$0xff] %v1048_v52  ;;  %v1402_v54 = vpop.f32.mrb[60].mxu0  ;;  %v908_v38 = vadd.f32 %v1401_v25, %v2186_v57 }
 0x174   : > { %v1403_v55 = vpop.f32.mrb[61].mxu0 }
 0x175   : > { %v1057_v56 = vpop.f32.mrb[60].mxu1  ;;  %v1404_v59 = vadd.f32 %v1403_v55, %v1402_v54  ;;  %v1053_v33 = vadd.f32 %v1052_v51, %v908_v38 }
 0x176   : > { %v1059_v48 = vpop.f32.mrb[61].mxu1 }
 0x177   : > { %1079 = vst [vmem:[%s2199_s28 + $0x68] sm:$0xff] %v1053_v33  ;;  %v1405_v60 = vpop.f32.mrb[62].mxu0  ;;  %v913_v47 = vadd.f32 %v1404_v59, %v2189_v3 }
 0x178   : > { %v1406_v61 = vpop.f32.mrb[63].mxu0 }
 0x179   : > { %v1062_v62 = vpop.f32.mrb[62].mxu1  ;;  %v1407_v0 = vadd.f32 %v1406_v61, %v1405_v60  ;;  %v1058_v1 = vadd.f32 %v1057_v56, %v913_v47 }
 0x17a   : > { %v1064_v41 = vpop.f32.mrb[63].mxu1 }
 0x17b   : > { %1080 = vst [vmem:[%s2199_s28 + $0x70] sm:$0xff] %v1058_v1  ;;  %v918_v4 = vadd.f32 %v1407_v0, %v2192_v13 }
 0x17d   : > { %v1063_v5 = vadd.f32 %v1062_v62, %v918_v4 }
 0x17f   : > { %1081 = vst [vmem:[%s2199_s28 + $0x78] sm:$0xff] %v1063_v5 }
 0x180 PF: > { %s13_s12 = sadd.s32 1, %s1562_s12  }
 0x181   : > { %p10_p4 = scmp.ge.s32.totalorder %s13_s12, 4  }
 0x183   :  { %12 = sbr.rel (!%p10_p4) target bundleno = 1 (0x1), region = 62 }

</bundles_post_ra>
